<compile_context>
chip_gen: v6e
topology: v6e:2x2x1
jax: 0.10.0
libtpu: 0.0.40
codegen_flags: <defaults>
</compile_context>

<pallas_src>
import functools
import math

import jax
import jax.numpy as jnp
from jax.experimental import pallas as pl
from jax.experimental.pallas import tpu as pltpu


def _layernorm_kernel(x_ref, alpha_ref, bias_ref, o_ref, *, eps, features):
    # x_ref:     (TM, F)
    # alpha_ref: (1, F)   bias_ref: (1, F)
    x = x_ref[...].astype(jnp.float32)
    mean = jnp.mean(x, axis=-1, keepdims=True)
    xc = x - mean
    # Unbiased (Bessel-corrected) variance, matching torch.std(unbiased=True).
    var = jnp.sum(xc * xc, axis=-1, keepdims=True) / (features - 1)
    std = jnp.sqrt(var)
    alpha = alpha_ref[...].astype(jnp.float32)  # (1, F) broadcasts over rows
    bias = bias_ref[...].astype(jnp.float32)
    y = alpha * xc / (std + eps) + bias
    o_ref[...] = y.astype(o_ref.dtype)


@functools.partial(jax.jit, static_argnames=("eps", "block_m"))
def layer_normalization(x, alpha, bias, *, eps=1e-6, block_m=256):
    """x: (..., features); alpha, bias: (features,)."""
    orig_shape = x.shape
    features = orig_shape[-1]
    m = math.prod(orig_shape[:-1])
    x2d = x.reshape(m, features)
    alpha2d = alpha.reshape(1, features)
    bias2d = bias.reshape(1, features)

    # Fixed M tile so the grid has multiple steps and DMA/compute pipeline;
    # keep it a multiple of 8 sublanes (or the full extent for tiny inputs).
    tm = min(block_m, m)
    if tm < m:
        tm = max(8, (tm // 8) * 8)
    grid = (pl.cdiv(m, tm),)

    itemsize = jnp.dtype(x.dtype).itemsize
    cost = pl.CostEstimate(
        flops=8 * m * features,                      # mean/var/scale/shift
        transcendentals=m,                           # one sqrt per row
        bytes_accessed=(2 * m * features) * itemsize
        + 2 * features * jnp.dtype(alpha.dtype).itemsize,
    )

    out2d = pl.pallas_call(
        functools.partial(_layernorm_kernel, eps=eps, features=features),
        out_shape=jax.ShapeDtypeStruct((m, features), x.dtype),
        grid_spec=pltpu.PrefetchScalarGridSpec(
            num_scalar_prefetch=0,
            grid=grid,
            in_specs=[
                pl.BlockSpec((tm, features), lambda i: (i, 0)),   # x tile
                pl.BlockSpec((1, features), lambda i: (0, 0)),    # alpha
                pl.BlockSpec((1, features), lambda i: (0, 0)),    # bias
            ],
            out_specs=pl.BlockSpec((tm, features), lambda i: (i, 0)),
        ),
        compiler_params=pltpu.CompilerParams(
            dimension_semantics=("parallel",)),
        cost_estimate=cost,
    )(x2d, alpha2d, bias2d)

    return out2d.reshape(orig_shape)


if __name__ == "__main__":
    batch, seq, features = 2, 8, 128   # lane-dense last dim (multiple of 128)
    eps = 1e-6

    key = jax.random.PRNGKey(0)
    kx, ka, kb = jax.random.split(key, 3)
    x = jax.random.normal(kx, (batch, seq, features), jnp.float32)
    # Module init is ones/zeros; perturb so scale/shift are actually exercised.
    alpha = 1.0 + 0.1 * jax.random.normal(ka, (features,), jnp.float32)
    bias = 0.1 * jax.random.normal(kb, (features,), jnp.float32)

    # block_m=8 so the tiny demo still runs a multi-step (pipelined) grid.
    out = layer_normalization(x, alpha, bias, eps=eps, block_m=8)
    out = jax.block_until_ready(out)

    # Plain-JAX reference matching torch semantics (unbiased std, eps on std).
    mean = x.mean(-1, keepdims=True)
    var = jnp.sum((x - mean) ** 2, axis=-1, keepdims=True) / (features - 1)
    std = jnp.sqrt(var)
    ref = alpha * (x - mean) / (std + eps) + bias

    assert out.shape == (batch, seq, features)
    assert jnp.allclose(out, ref, atol=1e-5, rtol=1e-5)

    print("KERNEL_OK")
</pallas_src>

<mosaic_0001>
module attributes {stable_mosaic.version = 11 : i64} {
  func.func @_layernorm_kernel(%arg0: i32, %arg1: memref<8x128xf32, #tpu.memory_space<vmem>>, %arg2: memref<1x128xf32, #tpu.memory_space<vmem>>, %arg3: memref<1x128xf32, #tpu.memory_space<vmem>>, %arg4: memref<8x128xf32, #tpu.memory_space<vmem>>) attributes {dimension_semantics = [#tpu.dimension_semantics<parallel>], iteration_bounds = array<i64: 2>, scalar_prefetch = 0 : i64, scratch_operands = 0 : i64, tpu.core_type = #tpu.core_type<tc>, window_params = [{transform_indices = @transform_0, window_bounds = array<i64: 8, 128>}, {pipeline_mode = #tpu.pipeline_mode<synchronous>, transform_indices = @transform_1, window_bounds = array<i64: 1, 128>}, {pipeline_mode = #tpu.pipeline_mode<synchronous>, transform_indices = @transform_2, window_bounds = array<i64: 1, 128>}, {transform_indices = @transform_3, window_bounds = array<i64: 8, 128>}]} {
    %c0 = arith.constant 0 : index
    %c0_0 = arith.constant 0 : index
    %0 = vector.load %arg1[%c0, %c0_0] : memref<8x128xf32, #tpu.memory_space<vmem>>, vector<8x128xf32>
    %cst = arith.constant dense<0.000000e+00> : vector<8xf32>
    %1 = vector.multi_reduction <add>, %0, %cst [1] : vector<8x128xf32> to vector<8xf32>
    %2 = vector.shape_cast %1 : vector<8xf32> to vector<8x1xf32>
    %cst_1 = arith.constant 1.280000e+02 : f32
    %3 = vector.broadcast %cst_1 : f32 to vector<8x1xf32>
    %4 = arith.divf %2, %3 : vector<8x1xf32>
    %5 = vector.broadcast %4 : vector<8x1xf32> to vector<8x128xf32>
    %6 = arith.subf %0, %5 : vector<8x128xf32>
    %7 = arith.mulf %6, %6 : vector<8x128xf32>
    %cst_2 = arith.constant dense<0.000000e+00> : vector<8xf32>
    %8 = vector.multi_reduction <add>, %7, %cst_2 [1] : vector<8x128xf32> to vector<8xf32>
    %9 = vector.shape_cast %8 : vector<8xf32> to vector<8x1xf32>
    %cst_3 = arith.constant 1.270000e+02 : f32
    %10 = vector.broadcast %cst_3 : f32 to vector<8x1xf32>
    %11 = arith.divf %9, %10 : vector<8x1xf32>
    %12 = math.sqrt %11 : vector<8x1xf32>
    %c0_4 = arith.constant 0 : index
    %c0_5 = arith.constant 0 : index
    %13 = vector.load %arg2[%c0_4, %c0_5] : memref<1x128xf32, #tpu.memory_space<vmem>>, vector<1x128xf32>
    %c0_6 = arith.constant 0 : index
    %c0_7 = arith.constant 0 : index
    %14 = vector.load %arg3[%c0_6, %c0_7] : memref<1x128xf32, #tpu.memory_space<vmem>>, vector<1x128xf32>
    %15 = vector.broadcast %13 : vector<1x128xf32> to vector<8x128xf32>
    %16 = arith.mulf %15, %6 : vector<8x128xf32>
    %cst_8 = arith.constant 9.99999997E-7 : f32
    %17 = vector.broadcast %cst_8 : f32 to vector<8x1xf32>
    %18 = arith.addf %12, %17 : vector<8x1xf32>
    %19 = vector.broadcast %18 : vector<8x1xf32> to vector<8x128xf32>
    %20 = arith.divf %16, %19 : vector<8x128xf32>
    %21 = vector.broadcast %14 : vector<1x128xf32> to vector<8x128xf32>
    %22 = arith.addf %20, %21 : vector<8x128xf32>
    %c0_9 = arith.constant 0 : index
    %c0_10 = arith.constant 0 : index
    %23 = vector.load %arg4[%c0_9, %c0_10] : memref<8x128xf32, #tpu.memory_space<vmem>>, vector<8x128xf32>
    tpu.vector_store %arg4[%c0_9, %c0_10], %22 {strides = array<i32>} : memref<8x128xf32, #tpu.memory_space<vmem>>, vector<8x128xf32>,
    return
  }
  func.func @transform_0(%arg0: i32) -> (i32, i32) {
    %c0_i32 = arith.constant 0 : i32
    %c0_i32_0 = arith.constant 0 : i32
    return %arg0, %c0_i32 : i32, i32
  }
  func.func @transform_1(%arg0: i32) -> (i32, i32) {
    %c0_i32 = arith.constant 0 : i32
    %c0_i32_0 = arith.constant 0 : i32
    %c0_i32_1 = arith.constant 0 : i32
    return %c0_i32, %c0_i32_0 : i32, i32
  }
  func.func @transform_2(%arg0: i32) -> (i32, i32) {
    %c0_i32 = arith.constant 0 : i32
    %c0_i32_0 = arith.constant 0 : i32
    %c0_i32_1 = arith.constant 0 : i32
    return %c0_i32, %c0_i32_0 : i32, i32
  }
  func.func @transform_3(%arg0: i32) -> (i32, i32) {
    %c0_i32 = arith.constant 0 : i32
    %c0_i32_0 = arith.constant 0 : i32
    return %arg0, %c0_i32 : i32, i32
  }
}

</mosaic_0001>

<bundles_post_ra>
// kernel: layer_normalization.1
= control target key start
LH: loop header
LB: loop body
LE: loop exit
PB: predicated region body
PF: predicated region fallthrough
CT: control target
= control target key end

     0   :  { %8 = vsyncpa [#allocation3], 0  ;;  %s635_s0 = inlined_call_operand.hbm [shape: f32[16,128], index: 0, kind: input, shape index: {}]   ;;  %s636_s1 = inlined_call_operand.vmem [shape: f32[1,128], index: 1, kind: input, shape index: {}]   ;;  %s637_s2 = inlined_call_operand.vmem [shape: f32[1,128], index: 2, kind: input, shape index: {}]   ;;  %s638_s3 = inlined_call_operand.hbm [shape: f32[16,128], index: 3, kind: output, shape index: {}]  }
   0x1   :  { %10 = vsyncpa [#allocation3 + $0x1], 0 }
   0x2   :  { %11 = vsyncpa [#allocation4], 0 }
   0x3   :  { %13 = vsyncpa [#allocation4 + $0x1], 0  ;;  %s488_s12 = smov 0   ;;  %s490_s13 = smov 0  }
   0x4   :  { %s492_s14 = smov 0   ;;  %s494_s15 = smov 0  }
   0x5 LB: > { %s509_s16 = sadd.s32 4294967295, %s464_s15   ;;  %s308_s17 = sadd.s32 4294967294, %s464_s15   ;;  %s464_s15 = sphi %s494_s15, %s655_s15   ;;  %s460_s14 = sphi %s492_s14, %s654_s14   ;;  %s456_s13 = sphi %s490_s13, %s653_s13   ;;  %s452_s12 = sphi %s488_s12, %s652_s12  }
   0x6   : > { %s513_s18 = sadd.s32 1, %s464_s15   ;;  %s26_s19 = sadd.s32 1, %s460_s14 }
   0x7   : > { %s23_s20 = ssub.s32 %s464_s15, %s513_s18  ;;  %p33_p0 = scmp.ne.s32.totalorder %s460_s14, %s456_s13 }
   0x8   : > { %p24_p1 = scmp.eq.s32.totalorder %s23_s20, 0  ;;  %p34_p2 = scmp.eq.s32.totalorder %s464_s15, 0 }
   0x9   : > { %p39_p3 = scmp.ne.s32.totalorder %s456_s13, %s452_s12  ;;  %p40_p4 = scmp.eq.s32.totalorder %s509_s16, 0 }
   0xa   : > { %s525_s21 = scalar_select %p24_p1, %s460_s14, %s26_s19  }
   0xb   : > { %p527_p5 = por %p34_p2, %p33_p0  ;;  %p531_p6 = por %p40_p4, %p39_p3 }
   0xc   : > { %p105_p7 = scmp.eq.s32.totalorder %s509_s16, 1  ;;  %p111_p8 = scmp.eq.s32.totalorder %s308_s17, 1 }
   0xd   : > { %s642_s23 = scalar_select %p531_p6, 1, 0 }
   0xe   : > { %p334_p10 = scmp.lt.s32.totalorder %s464_s15, 2  ;;  %p538_p11 = por %p105_p7, %p33_p0 }
   0xf   : > { %p542_p12 = por %p111_p8, %p39_p3  ;;  %s137_s26 = sand.u32 1, %s460_s14  }
  0x10   : > { %s643_s24 = scalar_select %p538_p11, 1, 0 }
  0x11   : > { %s644_s25 = scalar_select %p542_p12, 1, 0 }
  0x12   : > { %s312_s27 = sshll.u32 %s464_s15, 7  ;;  %s311_s28 = sshll.u32 %s137_s26, 3 }
  0x13   : > { %s551_s4 = scalar_lea.hbm %s635_s0, %s312_s27  ;;  %s141_s5 = scalar_lea.vmem [#allocation2], %s311_s28 }
  0x14   : > { %s148_s6 = sshll.u32 %s141_s5, 4  ;;  %p555_p13 = pnand %p334_p10, %p527_p5  ;;  %s559_s6 = int_to_ptr.vmem [resolvable:$true] %s148_s6 }
  0x15   : > { %s138_s8 = scalar_lea.sflag [#allocation3], %s137_s26  ;;  %s372_s9 = scalar_lea.hbm %s551_s4, 128 }
  0x16   : > { %p373_p2 = scmp.ne.s32.totalorder %s551_s4, %s372_s9  ;;  %p374_p3 = pneg %p555_p13 }
  0x17   : > { %s377_s17 = scalar_lea.hbm %s635_s0, 256  ;;  %p378_p5 = scmp.lt.s32.totalorder %s551_s4, %s635_s0 }
  0x18   : > { %p375_p4 = pnand %p374_p3, %p373_p2  ;;  %p379_p8 = scmp.lt.s32.totalorder %s377_s17, %s372_s9 }
  0x1a   : > { %p376_p7 = pneg %p375_p4  ;;  %p380_p10 = por %p379_p8, %p378_p5 }
  0x1c   : > { %p381_p9 = pnand %p380_p10, %p376_p7 }
  0x1e   : > { %384 = shalt.err (!%p381_p9)
}
  0x1f   : > { %s385_s22 = scalar_lea.vmem %s559_s6, 128  ;;  %s466_s26 = smov [#allocation2]  }
  0x20   : > { %p386_p0 = scmp.ne.s32.totalorder %s559_s6, %s385_s22  ;;  %s390_s27 = sshll.u32 %s466_s26, 4  ;;  %s391_s27 = int_to_ptr.vmem [resolvable:$false] %s390_s27 }
  0x21   : > { %s392_s28 = scalar_lea.vmem %s391_s27, 256  ;;  %p393_p4 = scmp.lt.s32.totalorder %s559_s6, %s391_s27 }
  0x22   : > { %p388_p1 = pnand %p386_p0, %p374_p3  ;;  %p394_p12 = scmp.lt.s32.totalorder %s392_s28, %s385_s22 }
  0x24   : > { %p389_p2 = pneg %p388_p1  ;;  %p395_p11 = por %p394_p12, %p393_p4 }
  0x26   : > { %p396_p6 = pnand %p395_p11, %p389_p2 }
  0x28   : > { %399 = shalt.err (!%p396_p6)
}
  0x29   : > { %329 = dma.hbm_to_vmem [thread:$0]  (!%p555_p13), %s551_s4, 128, %s559_s6, %s138_s8  }
  0x2a   : > { %p646_p9 = scmp.lt.s32.totalorder %s464_s15, 3  ;;  %p647_p7 = scmp.ge.s32.totalorder %s464_s15, 1 }
  0x2c   : > { %p154_p0 = pnand %p647_p7, %p646_p9 }
  0x2d   : > { %s586_s29 = sand.u32 (!%p154_p0), 1, %s456_s13   ;;  %p648_p6 = scmp.ne.s32.totalorder (!%p154_p0), %s642_s23, 0 }
  0x2e   : > { %157 = sbr.rel (%p154_p0) target bundleno = 388 (0x184), region = 32  ;;  %s314_s30 = sshll.u32 (!%p154_p0), %s586_s29, 3 }
  0x2f   : > { %s160_s5 = scalar_lea.sflag (!%p154_p0), [#allocation3], %s586_s29  ;;  %s163_s9 = scalar_lea.vmem (!%p154_p0), [#allocation2], %s314_s30 }
  0x33   : > { %443 = dma.done.wait (%p648_p6), %s160_s5, 128  }
  0x34   : > { %445 = vsyncadd (%p648_p6), %s160_s5, 4294967168  ;;  %v186_v0 = vld [vmem:[%s163_s9] sm:$0xff]  ;;  %s319_s8 = sshll.u32 %s509_s16, 7  ;;  %s185_s10 = scalar_lea.vmem [#allocation5], %s314_s30 }
  0x35   : > { %187 = vadd.xlane.f32.xlu0 %v186_v0  ;;  %v316_v13 = vld [vmem:[%s636_s1] ss:$0 sm:$0xff]  ;;  %s238_s11 = sshll.u32 %s185_s10, 4  ;;  %s236_s20 = scalar_lea.hbm %s638_s3, %s319_s8  ;;  %s239_s11 = int_to_ptr.vmem [resolvable:$true] %s238_s11 }
  0x36   : > { %v317_v16 = vld [vmem:[%s637_s2] ss:$0 sm:$0xff]  ;;  %s225_s22 = scalar_lea.sflag [#allocation4], %s586_s29  ;;  %s400_s26 = scalar_lea.vmem %s239_s11, 128 }
  0x37   : > { %p401_p11 = scmp.ne.s32.totalorder %s239_s11, %s400_s26  ;;  %p649_p12 = scmp.ne.s32.totalorder %s643_s24, 0 }
  0x38   : > { %s467_s27 = smov [#allocation5]  }
  0x39   : > { %p402_p13 = pnand %p401_p11, %p649_p12  ;;  %s404_s28 = sshll.u32 %s467_s27, 4  ;;  %s405_s28 = int_to_ptr.vmem [resolvable:$false] %s404_s28 }
  0x3a   : > { %s406_s16 = scalar_lea.vmem %s405_s28, 256  ;;  %p407_p3 = scmp.lt.s32.totalorder %s239_s11, %s405_s28 }
  0x3b   : > { %p403_p1 = pneg %p402_p13  ;;  %p408_p5 = scmp.lt.s32.totalorder %s406_s16, %s400_s26 }
  0x3d   : > { %p409_p8 = por %p408_p5, %p407_p3 }
  0x3f   : > { %p410_p10 = pnand %p409_p8, %p403_p1 }
  0xbe   : > { %v188_v1 = vpop.xlane.xlu0 %187 }
  0xbf   : > { %v190_v2 = vmul.f32 0.0078125, %v188_v1 }
  0xc1   : > { %v191_v3 = vsub.f32 %v186_v0, %v190_v2 }
  0xc3   : > { %v192_v4 = vmul.f32 %v191_v3, %v191_v3  ;;  %v212_v14 = vmul.f32 %v316_v13, %v191_v3 }
  0xc5   : > { %193 = vadd.xlane.f32.xlu0 %v192_v4 }
 0x14e   : > { %v194_v5 = vpop.xlane.xlu0 %193 }
 0x14f   : > { %v196_v6 = vmul.f32 0.007874016, %v194_v5 }
 0x151   : > { %368 = vrsqrt.f32 %v196_v6  ;;  %vm199_vm0 = vcmp.eq.f32.partialorder %v196_v6, inf  ;;  %v202_v9 = vand.u32 2147483648, %v196_v6  ;;  %vm201_vm1 = vcmp.eq.f32.partialorder %v196_v6, 0.0 }
 0x15e   : > { %v369_v7 = vpop.eup %368 }
 0x15f   : > { %v198_v8 = vmul.f32 %v369_v7, %v196_v6 }
 0x161   : > { %v200_v10 = vsel %vm199_vm0, %v196_v6, %v198_v8 }
 0x162   : > { %v203_v11 = vsel %vm201_vm1, %v202_v9, %v200_v10 }
 0x163   : > { %v213_v12 = vadd.f32 1e-06, %v203_v11 }
 0x165   : > { %370 = vrcp.f32 %v213_v12 }
 0x172   : > { %v371_v15 = vpop.eup %370 }
 0x173   : > { %v215_v17 = vmul.f32 %v371_v15, %v212_v14 }
 0x175   : > { %v222_v18 = vadd.f32 %v317_v16, %v215_v17 }
 0x177   : > { %223 = vst [vmem:[%s185_s10] sm:$0xff] %v222_v18 }
 0x178   : > { %413 = shalt.err (!%p410_p10)
}
 0x179   : > { %s414_s30 = scalar_lea.hbm %s236_s20, 128  ;;  %s418_s9 = scalar_lea.hbm %s638_s3, 256 }
 0x17a   : > { %p415_p2 = scmp.ne.s32.totalorder %s236_s20, %s414_s30  ;;  %p419_p7 = scmp.lt.s32.totalorder %s236_s20, %s638_s3 }
 0x17b   : > { %p420_p0 = scmp.lt.s32.totalorder %s418_s9, %s414_s30 }
 0x17c   : > { %p416_p4 = pnand %p415_p2, %p649_p12 }
 0x17d   : > { %p421_p6 = por %p420_p0, %p419_p7 }
 0x17e   : > { %p417_p9 = pneg %p416_p4 }
 0x180   : > { %p422_p11 = pnand %p421_p6, %p417_p9 }
 0x182   : > { %425 = shalt.err (!%p422_p11)
}
 0x183   : > { %324 = dma.vmem_to_hbm [thread:$0]  (%p649_p12), %s239_s11, 128, %s236_s20, %s225_s22  }
 0x184 PF: > { %s250_s6 = sand.u32 1, %s452_s12   ;;  %p650_p13 = scmp.ne.s32.totalorder %s644_s25, 0 }
 0x185   : > { %p651_p1 = scmp.ge.s32.totalorder %s464_s15, 2  ;;  %s251_s7 = scalar_lea.sflag [#allocation4], %s250_s6 }
 0x187   : > { %p331_p3 = pnand %p651_p1, %p650_p13 }
 0x189   : > { %p332_p5 = pneg %p331_p3 }
 0x18b   : > { %447 = dma.done.wait (%p332_p5), %s251_s7, 128  }
 0x18c   : > { %449 = vsyncadd (%p332_p5), %s251_s7, 4294967168  ;;  %p16_p8 = scmp.ge.s32.totalorder %s513_s18, 4   ;;  %s652_s12 = smov %s456_s13 }
 0x18d   : > { %s653_s13 = smov %s460_s14  ;;  %s654_s14 = smov %s525_s21 }
 0x18e   : > { %s655_s15 = smov %s513_s18  ;;  %18 = sbr.rel (!%p16_p8) target bundleno = 5 (0x5), region = 77 }
 0x193   :  { %256 = vsyncpa [#allocation3], 1 }
 0x194   :  { %258 = vsyncpa [#allocation3 + $0x1], 1 }
 0x195   :  { %259 = vsyncpa [#allocation4], 1 }
 0x196   :  { %261 = vsyncpa [#allocation4 + $0x1], 1 }

</bundles_post_ra>
